<compile_context>
chip_gen: v6e
topology: v6e:2x2x1
jax: 0.10.0
libtpu: 0.0.40
codegen_flags: <defaults>
</compile_context>

<pallas_src>
import functools
import math

import jax
import jax.numpy as jnp
from jax import lax
from jax.experimental import pallas as pl
from jax.experimental.pallas import tpu as pltpu


# ----------------------------- kernel -----------------------------
def _embed_kernel(x_ref, pe_ref, w_ref, o1_ref, o2_ref, o3_ref, *, pre_stacked):
    # x_ref : (Bt, Lt, C+2)      folded values + [date, temporal] marks        (pre_stacked=False)
    #         (Bt, Lt, 3*(C+2))  tap-stacked version of the above              (pre_stacked=True)
    # pe_ref: (Lt, D)            positional-embedding rows for this tile
    # w_ref : (3*(C+2), 2*D)     block-diagonal packed conv weights [Wv | 0 ; 0 | Wmark]
    D = pe_ref.shape[-1]

    if pre_stacked:
        xs = x_ref[...]                                              # (Bt, Lt, 3*(C+2))
    else:
        x = x_ref[...]                                               # (Bt, L, C+2)
        xs = jnp.concatenate(
            [jnp.roll(x, 1, axis=1), x, jnp.roll(x, -1, axis=1)], axis=-1)  # (Bt, L, 3*(C+2))

    bt, lt, kdim = xs.shape
    # ONE fused MXU matmul: columns [0:D] = value embedding, [D:2D] = temporal+date embedding.
    y = jnp.dot(xs.reshape(bt * lt, kdim), w_ref[...],
                preferred_element_type=jnp.float32).reshape(bt, lt, 2 * D)
    x0 = y[:, :, :D]
    xm = y[:, :, D:]

    s = x0 + pe_ref[...][None, :, :]                                 # value + positional
    o1_ref[...] = s                                                  # dropout(x0 + pe)  (identity)
    o2_ref[...] = xm                                                 # dropout(x2 + x3)
    o3_ref[...] = s + xm                                             # in-kernel: no wrapper re-read


# ----------------------------- wrapper -----------------------------
def _chip_config():
    """Generation-aware VMEM limits / grid-step targets."""
    try:
        kind = jax.devices()[0].device_kind.lower()
    except Exception:
        kind = ""
    if "7" in kind:                        # v7x: 64 MiB physical VMEM, 2 TensorCores
        return dict(vmem_limit=48 * 2**20, tile_budget=30 * 2**20, min_steps=4)
    if "v6" in kind or "v5" in kind:       # v5e/v6e: 128 MiB physical VMEM, 1 TensorCore
        return dict(vmem_limit=100 * 2**20, tile_budget=64 * 2**20, min_steps=2)
    return dict(vmem_limit=32 * 2**20, tile_budget=20 * 2**20, min_steps=2)


def _pad(v, m):
    return -(-v // m) * m


def _blk_bytes_f32(bt, rows, cols):
    """VMEM bytes for one f32 block, including (8,128) tile padding of the minor dims."""
    return 4 * bt * _pad(rows, 8) * _pad(cols, 128)


def positional_embedding_mark(x_like, pe_table):
    """Literal forward of PositionalEmbedding_mark: pe[:, :x.size(1)]."""
    return pe_table[None, : x_like.shape[1], :]


def data_embedding(x, x_mark, pe_table, w_value, w_temporal, w_date,
                   *, batch_tile=None, seq_steps=None):
    """x: (B, L, C) f32, x_mark: (B, L, M) f32 (cols 0=date, 1=temporal used).

    w_value:    torch-layout (d_model, C, 3)
    w_temporal: torch-layout (d_model, 1, 3)
    w_date:     torch-layout (d_model, 1, 3)
    Returns (out1, out2, out3), each (B, L, d_model), out3 == out1 + out2 (written in-kernel).
    """
    B, L, C = x.shape
    D = w_value.shape[0]
    C2 = C + 2

    # Fold the two used mark columns into x's channel dim (single lane-padded input stream).
    # Channel layout: [x_0 .. x_{C-1}, date (mark col 0), temporal (mark col 1)].
    x_full = jnp.concatenate([x, x_mark[:, :, :2]], axis=-1).astype(jnp.float32)   # (B, L, C+2)

    # Block-diagonal packed weight (3*(C+2), 2*D); tap-major blocks of C+2 rows.
    wv = jnp.transpose(w_value, (2, 1, 0))            # (3, C, D)
    wt = jnp.transpose(w_temporal[:, 0, :], (1, 0))   # (3, D)
    wd = jnp.transpose(w_date[:, 0, :], (1, 0))       # (3, D)
    w_big = jnp.zeros((3 * C2, 2 * D), jnp.float32)
    for k in range(3):
        w_big = w_big.at[k * C2:k * C2 + C, :D].set(wv[k])       # value channels -> cols [0:D]
        w_big = w_big.at[k * C2 + C, D:].set(wd[k])              # date channel   -> cols [D:2D]
        w_big = w_big.at[k * C2 + C + 1, D:].set(wt[k])          # temporal chan  -> cols [D:2D]

    pe = pe_table[:L].astype(jnp.float32)                         # (L, D)

    cfg = _chip_config()
    min_steps = cfg["min_steps"]

    # ---- sequence tiling: only engaged when batch alone cannot supply enough parallel grid steps
    # (e.g. B == 1 on v7x).  That path pre-stacks the conv taps in the wrapper so L-tiles need no
    # circular halo.
    if seq_steps is None:
        seq_steps = 1
        if B < min_steps:
            want = -(-min_steps // B)
            for s in range(want, L + 1):
                if L % s == 0 and (L // s) % 8 == 0:
                    seq_steps = s
                    break
    seq_steps = max(1, min(int(seq_steps), L))
    if L % seq_steps != 0 or (seq_steps > 1 and (L // seq_steps) % 8 != 0):
        seq_steps = 1
    Lt = L // seq_steps
    pre_stacked = seq_steps > 1

    if pre_stacked:
        x_in = jnp.concatenate(
            [jnp.roll(x_full, 1, axis=1), x_full, jnp.roll(x_full, -1, axis=1)], axis=-1)
        in_ch = 3 * C2                                            # (B, L, 3*(C+2))
    else:
        x_in = x_full
        in_ch = C2                                                # (B, L, C+2)

    # ---- batch tile: padding-aware VMEM accounting (double-buffered blocks + headroom).
    if batch_tile is None:
        headroom = 6 * 2**20                                      # Mosaic internal scratch / spills
        per_b = (2 * _blk_bytes_f32(1, Lt if pre_stacked else L, in_ch)   # input block
                 + 3 * 2 * _blk_bytes_f32(1, Lt, D))                      # three output blocks
        fixed = (2 * _blk_bytes_f32(1, Lt, D)                             # pe block
                 + 2 * _blk_bytes_f32(1, 3 * C2, 2 * D))                  # packed weights
        bt = max(1, (cfg["tile_budget"] - headroom - fixed) // per_b)
        bt = min(bt, B)
        n_b = max(1, min(B, -(-min_steps // seq_steps)))          # batch grid steps we want
        bt = min(bt, max(1, B // n_b))
        batch_tile = int(bt)
    batch_tile = int(max(1, min(batch_tile, B)))

    grid = (pl.cdiv(B, batch_tile), seq_steps)

    if pre_stacked:
        x_spec = pl.BlockSpec((batch_tile, Lt, in_ch), lambda b, l: (b, l, 0))
    else:
        x_spec = pl.BlockSpec((batch_tile, L, in_ch), lambda b, l: (b, 0, 0))
    in_specs = [
        x_spec,
        pl.BlockSpec((Lt, D), lambda b, l: (l, 0)),               # pe rows for this L-tile
        pl.BlockSpec((3 * C2, 2 * D), lambda b, l: (0, 0)),       # packed weights (resident)
    ]
    out_spec = pl.BlockSpec((batch_tile, Lt, D), lambda b, l: (b, l, 0))
    out_sds = jax.ShapeDtypeStruct((B, L, D), jnp.float32)

    # Memory-bound cost hint.
    flops = 2 * B * L * (3 * C2) * (2 * D)
    bytes_accessed = 4 * (B * L * in_ch + L * D + 3 * C2 * 2 * D + 3 * B * L * D)
    cost = pl.CostEstimate(flops=flops, transcendentals=0, bytes_accessed=bytes_accessed)

    kernel = functools.partial(_embed_kernel, pre_stacked=pre_stacked)
    out1, out2, out3 = pl.pallas_call(
        kernel,
        out_shape=(out_sds, out_sds, out_sds),
        grid_spec=pltpu.PrefetchScalarGridSpec(
            num_scalar_prefetch=0,
            grid=grid,
            in_specs=in_specs,
            out_specs=[out_spec, out_spec, out_spec]),
        compiler_params=pltpu.CompilerParams(
            dimension_semantics=("parallel", "parallel"),
            vmem_limit_bytes=cfg["vmem_limit"]),
        cost_estimate=cost,
    )(x_in, pe, w_big)
    return out1, out2, out3


# ---------------- reference (pure JAX, independent path via lax.conv) ----------------
def _circ_conv1d_ref(x_blc, w_dck):
    x_bcl = jnp.transpose(x_blc, (0, 2, 1))
    x_pad = jnp.pad(x_bcl, ((0, 0), (0, 0), (1, 1)), mode="wrap")
    y = lax.conv_general_dilated(
        x_pad, w_dck, window_strides=(1,), padding="VALID",
        dimension_numbers=("NCH", "OIH", "NCH"))
    return jnp.transpose(y, (0, 2, 1))


def _reference(x, x_mark, pe_table, w_value, w_temporal, w_date):
    L = x.shape[1]
    x0 = _circ_conv1d_ref(x, w_value)
    x1 = pe_table[None, :L, :]
    x2 = _circ_conv1d_ref(x_mark[:, :, 1:2], w_temporal)
    x3 = _circ_conv1d_ref(x_mark[:, :, 0:1], w_date)
    xm = x2 + x3
    return x0 + x1, xm, x0 + x1 + xm


def _make_pe(max_len, d_model):
    position = jnp.arange(max_len, dtype=jnp.float32)[:, None]
    div_term = jnp.exp(jnp.arange(0, d_model, 2, dtype=jnp.float32)
                       * (-(math.log(10000.0) / d_model)))
    pe = jnp.zeros((max_len, d_model), jnp.float32)
    pe = pe.at[:, 0::2].set(jnp.sin(position * div_term))
    pe = pe.at[:, 1::2].set(jnp.cos(position * div_term))
    return pe


if __name__ == "__main__":
    # Lane/sublane-friendly small shapes: L multiple of 8, d_model multiple of 128.
    B, L, C_IN, D_MODEL, N_MARK = 8, 32, 4, 128, 4
    MAX_LEN = 64

    key = jax.random.PRNGKey(0)
    k_x, k_m, k_wv, k_wt, k_wd = jax.random.split(key, 5)

    x = jax.random.normal(k_x, (B, L, C_IN), jnp.float32)
    x_mark = jax.random.normal(k_m, (B, L, N_MARK), jnp.float32)

    fan_in_v = C_IN * 3
    gain = math.sqrt(2.0 / (1.0 + 0.01 ** 2))
    w_value = jax.random.normal(k_wv, (D_MODEL, C_IN, 3), jnp.float32) * (gain / math.sqrt(fan_in_v))
    bound = 1.0 / math.sqrt(3.0)
    w_temporal = jax.random.uniform(k_wt, (D_MODEL, 1, 3), jnp.float32, -bound, bound)
    w_date = jax.random.uniform(k_wd, (D_MODEL, 1, 3), jnp.float32, -bound, bound)

    pe_table = _make_pe(MAX_LEN, D_MODEL)

    # --- PositionalEmbedding_mark literal forward (constant-table slice) ---
    pe_out = positional_embedding_mark(x_mark, pe_table)
    assert pe_out.shape == (1, L, D_MODEL)
    assert jnp.allclose(pe_out[0], pe_table[:L])

    # --- primary path: batch-tiled grid (standard, rolls in-kernel) ---
    out1, out2, out3 = data_embedding(x, x_mark, pe_table, w_value, w_temporal, w_date)
    jax.block_until_ready((out1, out2, out3))
    r1, r2, r3 = _reference(x, x_mark, pe_table, w_value, w_temporal, w_date)
    assert jnp.allclose(out1, r1, atol=1e-4, rtol=1e-4)
    assert jnp.allclose(out2, r2, atol=1e-4, rtol=1e-4)
    assert jnp.allclose(out3, r3, atol=1e-4, rtol=1e-4)

    # --- small-B fallback path: B == 1, sequence tiled (pre-stacked taps, 2 L-tiles) ---
    o1b, o2b, o3b = data_embedding(x[:1], x_mark[:1], pe_table, w_value, w_temporal, w_date,
                                   seq_steps=2)
    jax.block_until_ready((o1b, o2b, o3b))
    s1, s2, s3 = _reference(x[:1], x_mark[:1], pe_table, w_value, w_temporal, w_date)
    assert jnp.allclose(o1b, s1, atol=1e-4, rtol=1e-4)
    assert jnp.allclose(o2b, s2, atol=1e-4, rtol=1e-4)
    assert jnp.allclose(o3b, s3, atol=1e-4, rtol=1e-4)

    print("KERNEL_OK")
</pallas_src>

<mosaic_0001>
module attributes {stable_mosaic.version = 11 : i64} {
  func.func @_embed_kernel(%arg0: i32, %arg1: i32, %arg2: memref<4x32x6xf32, #tpu.memory_space<vmem>>, %arg3: memref<32x128xf32, #tpu.memory_space<vmem>>, %arg4: memref<18x256xf32, #tpu.memory_space<vmem>>, %arg5: memref<4x32x128xf32, #tpu.memory_space<vmem>>, %arg6: memref<4x32x128xf32, #tpu.memory_space<vmem>>, %arg7: memref<4x32x128xf32, #tpu.memory_space<vmem>>) attributes {dimension_semantics = [#tpu.dimension_semantics<parallel>, #tpu.dimension_semantics<parallel>], iteration_bounds = array<i64: 2, 1>, scalar_prefetch = 0 : i64, scratch_operands = 0 : i64, tpu.core_type = #tpu.core_type<tc>, window_params = [{transform_indices = @transform_0, window_bounds = array<i64: 4, 32, 6>}, {transform_indices = @transform_1, window_bounds = array<i64: 32, 128>}, {pipeline_mode = #tpu.pipeline_mode<synchronous>, transform_indices = @transform_2, window_bounds = array<i64: 18, 256>}, {transform_indices = @transform_3, window_bounds = array<i64: 4, 32, 128>}, {transform_indices = @transform_4, window_bounds = array<i64: 4, 32, 128>}, {transform_indices = @transform_5, window_bounds = array<i64: 4, 32, 128>}]} {
    %c0 = arith.constant 0 : index
    %c0_0 = arith.constant 0 : index
    %c0_1 = arith.constant 0 : index
    %0 = vector.load %arg2[%c0, %c0_0, %c0_1] : memref<4x32x6xf32, #tpu.memory_space<vmem>>, vector<4x32x6xf32>
    %1 = vector.extract_strided_slice %0 {offsets = [0, 31, 0], sizes = [4, 1, 6], strides = [1, 1, 1]} : vector<4x32x6xf32> to vector<4x1x6xf32>
    %2 = vector.extract_strided_slice %0 {offsets = [0, 0, 0], sizes = [4, 31, 6], strides = [1, 1, 1]} : vector<4x32x6xf32> to vector<4x31x6xf32>
    %3 = tpu.concatenate %1, %2 in 1 : vector<4x1x6xf32>, vector<4x31x6xf32> -> vector<4x32x6xf32>
    %4 = vector.extract_strided_slice %0 {offsets = [0, 1, 0], sizes = [4, 31, 6], strides = [1, 1, 1]} : vector<4x32x6xf32> to vector<4x31x6xf32>
    %5 = vector.extract_strided_slice %0 {offsets = [0, 0, 0], sizes = [4, 1, 6], strides = [1, 1, 1]} : vector<4x32x6xf32> to vector<4x1x6xf32>
    %6 = tpu.concatenate %4, %5 in 1 : vector<4x31x6xf32>, vector<4x1x6xf32> -> vector<4x32x6xf32>
    %7 = tpu.concatenate %3, %0, %6 in 2 : vector<4x32x6xf32>, vector<4x32x6xf32>, vector<4x32x6xf32> -> vector<4x32x18xf32>
    %8 = vector.shape_cast %7 : vector<4x32x18xf32> to vector<128x18xf32>
    %c0_2 = arith.constant 0 : index
    %c0_3 = arith.constant 0 : index
    %9 = vector.load %arg4[%c0_2, %c0_3] : memref<18x256xf32, #tpu.memory_space<vmem>>, vector<18x256xf32>
    %cst = arith.constant dense<0.000000e+00> : vector<128x256xf32>
    %10 = tpu.matmul %8, %9, %cst {dimension_numbers = #tpu.dot_dimension_numbers<[1], [0], [0], [1], [0, 0, 1, 1], [], []>} : vector<128x18xf32>, vector<18x256xf32>, vector<128x256xf32> -> vector<128x256xf32>
    %11 = vector.shape_cast %10 : vector<128x256xf32> to vector<4x32x256xf32>
    %12 = vector.extract_strided_slice %11 {offsets = [0, 0, 0], sizes = [4, 32, 128], strides = [1, 1, 1]} : vector<4x32x256xf32> to vector<4x32x128xf32>
    %13 = vector.extract_strided_slice %11 {offsets = [0, 0, 128], sizes = [4, 32, 128], strides = [1, 1, 1]} : vector<4x32x256xf32> to vector<4x32x128xf32>
    %c0_4 = arith.constant 0 : index
    %c0_5 = arith.constant 0 : index
    %14 = vector.load %arg3[%c0_4, %c0_5] : memref<32x128xf32, #tpu.memory_space<vmem>>, vector<32x128xf32>
    %15 = vector.shape_cast %14 : vector<32x128xf32> to vector<1x32x128xf32>
    %16 = vector.broadcast %15 : vector<1x32x128xf32> to vector<4x32x128xf32>
    %17 = arith.addf %12, %16 : vector<4x32x128xf32>
    %c0_6 = arith.constant 0 : index
    %c0_7 = arith.constant 0 : index
    %c0_8 = arith.constant 0 : index
    %18 = vector.load %arg5[%c0_6, %c0_7, %c0_8] : memref<4x32x128xf32, #tpu.memory_space<vmem>>, vector<4x32x128xf32>
    tpu.vector_store %arg5[%c0_6, %c0_7, %c0_8], %17 {strides = array<i32>} : memref<4x32x128xf32, #tpu.memory_space<vmem>>, vector<4x32x128xf32>,
    %c0_9 = arith.constant 0 : index
    %c0_10 = arith.constant 0 : index
    %c0_11 = arith.constant 0 : index
    %19 = vector.load %arg6[%c0_9, %c0_10, %c0_11] : memref<4x32x128xf32, #tpu.memory_space<vmem>>, vector<4x32x128xf32>
    tpu.vector_store %arg6[%c0_9, %c0_10, %c0_11], %13 {strides = array<i32>} : memref<4x32x128xf32, #tpu.memory_space<vmem>>, vector<4x32x128xf32>,
    %20 = arith.addf %17, %13 : vector<4x32x128xf32>
    %c0_12 = arith.constant 0 : index
    %c0_13 = arith.constant 0 : index
    %c0_14 = arith.constant 0 : index
    %21 = vector.load %arg7[%c0_12, %c0_13, %c0_14] : memref<4x32x128xf32, #tpu.memory_space<vmem>>, vector<4x32x128xf32>
    tpu.vector_store %arg7[%c0_12, %c0_13, %c0_14], %20 {strides = array<i32>} : memref<4x32x128xf32, #tpu.memory_space<vmem>>, vector<4x32x128xf32>,
    return
  }
  func.func @transform_0(%arg0: i32, %arg1: i32) -> (i32, i32, i32) {
    %c0_i32 = arith.constant 0 : i32
    %c0_i32_0 = arith.constant 0 : i32
    %c0_i32_1 = arith.constant 0 : i32
    return %arg0, %c0_i32, %c0_i32_0 : i32, i32, i32
  }
  func.func @transform_1(%arg0: i32, %arg1: i32) -> (i32, i32) {
    %c0_i32 = arith.constant 0 : i32
    %c0_i32_0 = arith.constant 0 : i32
    return %arg1, %c0_i32 : i32, i32
  }
  func.func @transform_2(%arg0: i32, %arg1: i32) -> (i32, i32) {
    %c0_i32 = arith.constant 0 : i32
    %c0_i32_0 = arith.constant 0 : i32
    %c0_i32_1 = arith.constant 0 : i32
    return %c0_i32, %c0_i32_0 : i32, i32
  }
  func.func @transform_3(%arg0: i32, %arg1: i32) -> (i32, i32, i32) {
    %c0_i32 = arith.constant 0 : i32
    %c0_i32_0 = arith.constant 0 : i32
    return %arg0, %arg1, %c0_i32 : i32, i32, i32
  }
  func.func @transform_4(%arg0: i32, %arg1: i32) -> (i32, i32, i32) {
    %c0_i32 = arith.constant 0 : i32
    %c0_i32_0 = arith.constant 0 : i32
    return %arg0, %arg1, %c0_i32 : i32, i32, i32
  }
  func.func @transform_5(%arg0: i32, %arg1: i32) -> (i32, i32, i32) {
    %c0_i32 = arith.constant 0 : i32
    %c0_i32_0 = arith.constant 0 : i32
    return %arg0, %arg1, %c0_i32 : i32, i32, i32
  }
}

</mosaic_0001>

<bundles_post_ra>
// kernel: tpu_custom_call.1
= control target key start
LH: loop header
LB: loop body
LE: loop exit
PB: predicated region body
PF: predicated region fallthrough
CT: control target
= control target key end

     0   :  { %s1893_s0 = inlined_call_operand.vmem [shape: f32[8,32,6], index: 0, kind: input, shape index: {}]   ;;  %s1894_s1 = inlined_call_operand.vmem [shape: f32[32,128], index: 1, kind: input, shape index: {}]   ;;  %s1895_s2 = inlined_call_operand.vmem [shape: f32[18,256], index: 2, kind: input, shape index: {}]   ;;  %s1896_s3 = inlined_call_operand.hbm [shape: f32[8,32,128], index: 3, kind: output, shape index: {0}]   ;;  %s1897_s4 = inlined_call_operand.hbm [shape: f32[8,32,128], index: 4, kind: output, shape index: {1}]   ;;  %s1898_s5 = inlined_call_operand.hbm [shape: f32[8,32,128], index: 5, kind: output, shape index: {2}]  }
   0x1   :  { %1901 = sst [smem:[#allocation9_spill]] %s1893_s0 }
   0x2   :  { %11 = vsyncpa [#allocation3], 0 }
   0x3   :  { %13 = vsyncpa [#allocation3 + $0x1], 0 }
   0x4   :  { %14 = vsyncpa [#allocation5], 0 }
   0x5   :  { %16 = vsyncpa [#allocation5 + $0x1], 0  ;;  %s1378_s18 = smov 0   ;;  %s1380_s19 = smov 0  }
   0x6   :  { %s1382_s20 = smov 0   ;;  %s1384_s21 = smov 0  }
   0x7   :  { %s1386_s22 = smov 0   ;;  %s1388_s23 = smov 0  }
   0x8 LB: > { %s1079_s24 = sadd.s32 4294967295, %s1338_s23   ;;  %s1899_s25 = sadd.s32 4294967294, %s1338_s23   ;;  %s1338_s23 = sphi %s1388_s23, %s22_s23   ;;  %s1334_s22 = sphi %s1386_s22, %s1913_s22   ;;  %s1330_s21 = sphi %s1384_s21, %s1912_s21   ;;  %s1326_s20 = sphi %s1382_s20, %s1911_s20   ;;  %s1322_s19 = sphi %s1380_s19, %s1910_s19   ;;  %s1318_s18 = sphi %s1378_s18, %s1909_s18  }
   0x9   : > { %s34_s26 = sadd.s32 1, %s1334_s22  ;;  %s116_s27 = sadd.s32 1, %s1326_s20 }
   0xa   : > { %p36_p0 = scmp.ge.s32.totalorder %s34_s26, 2  ;;  %p126_p1 = scmp.ne.s32.totalorder %s1326_s20, %s1322_s19 }
   0xb   : > { %p127_p2 = scmp.eq.s32.totalorder %s1079_s24, 1  ;;  %p132_p3 = scmp.ne.s32.totalorder %s1322_s19, %s1318_s18 }
   0xc   : > { %s1915_s26 = smov (%p36_p0, %s34_s26), 0  ;;  %p133_p5 = scmp.eq.s32.totalorder %s1899_s25, 1 }
   0xd   : > { %p1420_p4 = por %p127_p2, %p126_p1  ;;  %s111_s29 = ssub.s32 %s1334_s22, %s1915_s26 }
   0xe   : > { %p1084_p6 = scmp.ge.s32.totalorder %s1338_s23, 1  ;;  %p114_p7 = scmp.eq.s32.totalorder %s111_s29, 0 }
   0xf   : > { %p1429_p8 = por %p133_p5, %p132_p3  ;;  %p229_p9 = scmp.lt.s32.totalorder %s1338_s23, 3 }
  0x10   : > { %s1435_s6 = scalar_select %p114_p7, %s1326_s20, %s116_s27  }
  0x11   : > { %p230_p10 = pnand %p1084_p6, %p229_p9 }
  0x12   : > { %s1088_s7 = sshll.u32 (!%p230_p10), %s1330_s21, 2  ;;  %s1904_s0 = sld [smem:[#allocation9_spill]] (!%p230_p10) }
  0x13   : > { %233 = sbr.rel (%p230_p10) target bundleno = 469 (0x1d5), region = 32  ;;  %p274_p11 = scmp.lt.s32.totalorder (!%p230_p10), %s1088_s7, 7 }
  0x14   : > { %s1342_s12 = smov (!%p230_p10), 12   ;;  %s1900_s13 = sand.u32 (!%p230_p10), 1, %s1322_s19  }
  0x15   : > { %s1085_s14 = sshll.u32 (!%p230_p10), %s1900_s13, 7  ;;  %s1125_s15 = sshll.u32 (!%p230_p10), %s1330_s21, 11 }
  0x16   : > { %s1686_s17 = scalar_lea.vmem (!%p230_p10), [#allocation2], %s1085_s14  ;;  %s1689_s27 = scalar_lea.vmem (!%p230_p10), [#allocation4], %s1085_s14 }
  0x17   : > { %s1692_s29 = scalar_lea.vmem (!%p230_p10), [#allocation6], %s1085_s14  ;;  %s1756_s14 = sand.u32 (!%p230_p10), 1, %s1079_s24  }
  0x18   : > { %v557_v0 = vld [vmem:[%s1895_s2 + $0x28] sm:$0x3]  ;;  %vm607_vm0 = vcmask 1041408   ;;  %v556_v1 = vld [vmem:[%s1895_s2 + $0x20] sm:$0x3]  ;;  %v555_v2 = vld [vmem:[%s1895_s2 + $0x18] sm:$0xff]  ;;  %s1787_s25 = scalar_lea.hbm %s1898_s5, %s1125_s15 }
  0x19   : > { %1091 = vmatprep.subr.msk.mxu0 %vm607_vm0, %v557_v0  ;;  %1130 = vmatprep.subr.msk.mxu1 %vm607_vm0, %v557_v0  ;;  %v554_v3 = vld [vmem:[%s1895_s2 + $0x10] sm:$0xff]  ;;  %v553_v4 = vld [vmem:[%s1895_s2 + $0x8] sm:$0xff]  ;;  %s1917_s7 = smov (!%p274_p11, %s1088_s7), 7  ;;  %v552_v5 = vld [vmem:[%s1895_s2] sm:$0xff]  ;;  %v1340_v6 = vmov 0.0   ;;  %vm377_vm1 = vcmask 1046528  }
  0x1a   : > { %1092 = vmatpush1.msk.msra.mxu0 %vm607_vm0, %v556_v1  ;;  %1133 = vmatpush1.msk.msra.mxu1 %vm607_vm0, %v556_v1  ;;  %s1123_s8 = sshll.u32 %s1917_s7, 5  ;;  %s1341_s7 = smov 6   ;;  %vm332_vm2 = vcmask 1040384   ;;  %vm518_vm3 = vcmask 48128   ;;  %vm535_vm4 = vcmask 97280   ;;  %vm558_vm5 = vcmask 146432  }
  0x1b   : > { %642 = vmatprep.subr.mxu0 %v555_v2  ;;  %678 = vmatprep.mubr.f32.mxu0 %v1340_v6  ;;  %s1460_s11 = scalar_lea.vmem %s1904_s0, %s1123_s8  ;;  %s905_s16 = sshll.u32 %s1689_s27, 4  ;;  %s1771_s16 = int_to_ptr.vmem [resolvable:$true] %s905_s16 }
  0x1c   : > { %643 = vmatpush1.msra.mxu0 %v554_v3  ;;  %1131 = vmatprep.subr.mxu1 %v555_v2  ;;  %v301_v7 = vld [vmem:[%s1460_s11 + $0x48] sm:$0xff]  ;;  %v1464_v8 = vld [vmem:[%s1460_s11] sm:$0xff]  ;;  %v294_v15 = vld [vmem:[%s1460_s11 + $0x10] sm:$0xff]  ;;  %s886_s8 = sshll.u32 %s1686_s17, 4  ;;  %s924_s9 = sshll.u32 %s1692_s29, 4  ;;  %s1778_s8 = int_to_ptr.vmem [resolvable:$true] %s886_s8  ;;  %s1789_s9 = int_to_ptr.vmem [resolvable:$true] %s924_s9 }
  0x1d   : > { %644 = vmatprep.subr.mxu0 %v553_v4  ;;  %1134 = vmatpush1.msra.mxu1 %v554_v3  ;;  %v1467_v9 = vld [vmem:[%s1460_s11 + $0x40] sm:$0xff]  ;;  %v378_v10 = vrot.slane %v1464_v8, 1  ;;  %v293_v11 = vld [vmem:[%s1460_s11 + $0x8] sm:$0xff]  ;;  %v393_v12 = vrot.slane %v301_v7, 1  ;;  %v302_v16 = vld [vmem:[%s1460_s11 + $0x50] sm:$0xff]  ;;  %v346_v17 = vrot.slane %v301_v7, 7 }
  0x1e   : > { %645 = vmatpush1.msra.mxu0 %v552_v5  ;;  %1132 = vmatprep.subr.mxu1 %v553_v4  ;;  %v392_v13 = vrot.slane %v1467_v9, 1  ;;  %v379_v14 = vrot.slane %v293_v11, 1  ;;  %v345_v18 = vrot.slane %v1467_v9, 7  ;;  %v381_v21 = vrot.slane %v294_v15, 1  ;;  %v295_v23 = vld [vmem:[%s1460_s11 + $0x18] sm:$0xff]  ;;  %v1508_v39 = vld [vmem:[%s1460_s11 + $0x20] sm:$0xff] }
  0x1f   : > { %1135 = vmatpush1.msra.mxu1 %v552_v5  ;;  %726 = vmatprep.mubr.f32.mxu1 %v1340_v6  ;;  %v395_v22 = vrot.slane %v302_v16, 1  ;;  %v333_v24 = vrot.slane %v1464_v8, 7  ;;  %v312_v25 = vrot.slane %v295_v23, 7  ;;  %v303_v26 = vld [vmem:[%s1460_s11 + $0x58] sm:$0xff]  ;;  %v334_v33 = vrot.slane %v293_v11, 7  ;;  %v1511_v40 = vld [vmem:[%s1460_s11 + $0x60] sm:$0xff] }
  0x20   : > { %436 = vrot.lane.b32.xlu1 %v301_v7, %s1341_s7  ;;  %418 = vrot.lane.b32.xlu0 %v1464_v8, %s1341_s7  ;;  %v380_v19 = vsel %vm377_vm1, %v378_v10, %v379_v14  ;;  %v394_v20 = vsel %vm377_vm1, %v392_v13, %v393_v12  ;;  %v1490_v27 = vsel %vm332_vm2, %v345_v18, %v346_v17  ;;  %v314_v28 = vrot.slane %v303_v26, 7  ;;  %v299_v47 = vld [vmem:[%s1460_s11 + $0x38] sm:$0xff]  ;;  %v297_v55 = vld [vmem:[%s1460_s11 + $0x28] sm:$0xff]  ;;  %s1206_s21 = scalar_lea.vmem %s1771_s16, 2048 }
  0x21   : > { %v382_v29 = vsel %vm377_vm1, %v379_v14, %v381_v21  ;;  %v396_v30 = vsel %vm377_vm1, %v393_v12, %v395_v22  ;;  %v1497_v31 = vsel %vm332_vm2, %v312_v25, %v333_v24  ;;  %v336_v34 = vrot.slane %v294_v15, 7  ;;  %v307_v48 = vld [vmem:[%s1460_s11 + $0x78] sm:$0xff]  ;;  %v305_v56 = vld [vmem:[%s1460_s11 + $0x68] sm:$0xff]  ;;  %v298_v3 = vld [vmem:[%s1460_s11 + $0x30] sm:$0xff]  ;;  %p1207_p12 = scmp.ne.s32.totalorder %s1771_s16, %s1206_s21 }
  0x22   : > { %v1500_v32 = vsel %vm332_vm2, %v314_v28, %v345_v18  ;;  %v348_v35 = vrot.slane %v302_v16, 7  ;;  %v383_v36 = vrot.slane %v295_v23, 1  ;;  %v397_v37 = vrot.slane %v303_v26, 1  ;;  %v306_v4 = vld [vmem:[%s1460_s11 + $0x70] sm:$0xff]  ;;  %s1769_s11 = scalar_lea.hbm %s1897_s4, %s1125_s15 }
  0x23   : > { %v1505_v38 = vsel %vm332_vm2, %v333_v24, %v334_v33  ;;  %v1514_v41 = vsel %vm332_vm2, %v334_v33, %v336_v34  ;;  %v1520_v43 = vsel %vm332_vm2, %v336_v34, %v312_v25  ;;  %v339_v45 = vrot.slane %v1508_v39, 7  ;;  %p1208_p13 = pnand %p1207_p12, %p1420_p4 }
  0x24   : > { %434 = vrot.lane.b32.xlu0 %v1467_v9, %s1341_s7  ;;  %470 = vrot.lane.b32.xlu1 %v380_v19, %s1342_s12  ;;  %v1517_v42 = vsel %vm332_vm2, %v346_v17, %v348_v35  ;;  %v1523_v44 = vsel %vm332_vm2, %v348_v35, %v314_v28  ;;  %v351_v46 = vrot.slane %v1511_v40, 7  ;;  %v313_v49 = vrot.slane %v299_v47, 7 }
  0x25   : > { %v315_v50 = vrot.slane %v307_v48, 7  ;;  %v384_v51 = vsel %vm377_vm1, %v381_v21, %v383_v36  ;;  %v398_v52 = vsel %vm377_vm1, %v395_v22, %v397_v37  ;;  %v340_v57 = vrot.slane %v297_v55, 7  ;;  %p1209_p0 = pneg %p1208_p13 }
  0x26   : > { %v1534_v53 = vsel %vm332_vm2, %v313_v49, %v339_v45  ;;  %v352_v58 = vrot.slane %v305_v56, 7  ;;  %v414_v59 = vsel %vm377_vm1, %v383_v36, %v378_v10  ;;  %v416_v60 = vsel %vm377_vm1, %v397_v37, %v392_v13 }
  0x27   : > { %v1537_v54 = vsel %vm332_vm2, %v315_v50, %v351_v46  ;;  %v1550_v61 = vsel %vm332_vm2, %v339_v45, %v340_v57  ;;  %v385_v63 = vrot.slane %v1508_v39, 1  ;;  %v399_v0 = vrot.slane %v1511_v40, 1 }
  0x28   : > { %420 = vrot.lane.b32.xlu0 %v293_v11, %s1341_s7  ;;  %486 = vrot.lane.b32.xlu1 %v394_v20, %s1342_s12  ;;  %v1553_v62 = vsel %vm332_vm2, %v351_v46, %v352_v58  ;;  %v386_v1 = vrot.slane %v297_v55, 1  ;;  %v400_v2 = vrot.slane %v305_v56, 1  ;;  %v342_v5 = vrot.slane %v298_v3, 7 }
  0x29   : > { %v354_v7 = vrot.slane %v306_v4, 7  ;;  %v388_v12 = vrot.slane %v298_v3, 1  ;;  %v402_v13 = vrot.slane %v306_v4, 1  ;;  %v390_v18 = vrot.slane %v299_v47, 1 }
  0x2a   : > { %v387_v8 = vsel %vm377_vm1, %v385_v63, %v386_v1  ;;  %v401_v9 = vsel %vm377_vm1, %v399_v0, %v400_v2  ;;  %v1568_v10 = vsel %vm332_vm2, %v340_v57, %v342_v5  ;;  %v1578_v14 = vsel %vm332_vm2, %v342_v5, %v313_v49 }
  0x2b   : > { %v1571_v11 = vsel %vm332_vm2, %v352_v58, %v354_v7  ;;  %v1583_v17 = vsel %vm332_vm2, %v354_v7, %v315_v50  ;;  %v404_v19 = vrot.slane %v307_v48, 1  ;;  %v391_v20 = vsel %vm377_vm1, %v388_v12, %v390_v18 }
  0x2c   : > { %472 = vrot.lane.b32.xlu0 %v382_v29, %s1342_s12  ;;  %488 = vrot.lane.b32.xlu1 %v396_v30, %s1342_s12  ;;  %v415_v22 = vsel %vm377_vm1, %v390_v18, %v385_v63 }
  0x2d   : > { %v405_v21 = vsel %vm377_vm1, %v402_v13, %v404_v19 }
  0x30   : > { %422 = vrot.lane.b32.xlu0 %v294_v15, %s1341_s7  ;;  %438 = vrot.lane.b32.xlu1 %v302_v16, %s1341_s7  ;;  %v389_v15 = vsel %vm377_vm1, %v386_v1, %v388_v12  ;;  %v403_v16 = vsel %vm377_vm1, %v400_v2, %v402_v13 }
  0x34   : > { %474 = vrot.lane.b32.xlu0 %v384_v51, %s1342_s12  ;;  %490 = vrot.lane.b32.xlu1 %v398_v52, %s1342_s12 }
  0x38   : > { %424 = vrot.lane.b32.xlu0 %v295_v23, %s1341_s7  ;;  %440 = vrot.lane.b32.xlu1 %v303_v26, %s1341_s7  ;;  %v417_v23 = vsel %vm377_vm1, %v404_v19, %v399_v0 }
  0x3c   : > { %476 = vrot.lane.b32.xlu0 %v414_v59, %s1342_s12  ;;  %492 = vrot.lane.b32.xlu1 %v416_v60, %s1342_s12 }
  0x40   : > { %426 = vrot.lane.b32.xlu0 %v1508_v39, %s1341_s7  ;;  %442 = vrot.lane.b32.xlu1 %v1511_v40, %s1341_s7 }
  0x44   : > { %478 = vrot.lane.b32.xlu0 %v387_v8, %s1342_s12  ;;  %494 = vrot.lane.b32.xlu1 %v401_v9, %s1342_s12 }
  0x48   : > { %428 = vrot.lane.b32.xlu0 %v297_v55, %s1341_s7  ;;  %444 = vrot.lane.b32.xlu1 %v305_v56, %s1341_s7 }
  0x4c   : > { %480 = vrot.lane.b32.xlu0 %v389_v15, %s1342_s12  ;;  %496 = vrot.lane.b32.xlu1 %v403_v16, %s1342_s12 }
  0x50   : > { %430 = vrot.lane.b32.xlu0 %v298_v3, %s1341_s7  ;;  %446 = vrot.lane.b32.xlu1 %v306_v4, %s1341_s7 }
  0x54   : > { %482 = vrot.lane.b32.xlu0 %v391_v20, %s1342_s12  ;;  %498 = vrot.lane.b32.xlu1 %v405_v21, %s1342_s12 }
  0x58   : > { %432 = vrot.lane.b32.xlu0 %v299_v47, %s1341_s7  ;;  %448 = vrot.lane.b32.xlu1 %v307_v48, %s1341_s7  ;;  %s1343_s7 = smov [#allocation4]  }
  0x5c   : > { %484 = vrot.lane.b32.xlu0 %v415_v22, %s1342_s12  ;;  %500 = vrot.lane.b32.xlu1 %v417_v23, %s1342_s12  ;;  %s1776_s12 = scalar_lea.hbm %s1896_s3, %s1125_s15 }
  0x92   : > { %v437_v24 = vpop.permute.xlu1 %436  ;;  %v419_v25 = vpop.permute.xlu0 %418 }
  0x93   : > { %v519_v26 = vsel %vm518_vm3, %v1497_v31, %v419_v25  ;;  %v528_v31 = vsel %vm518_vm3, %v1490_v27, %v437_v24 }
  0x96   : > { %v435_v28 = vpop.permute.xlu0 %434  ;;  %v471_v29 = vpop.permute.xlu1 %470 }
  0x97   : > { %v536_v30 = vsel %vm535_vm4, %v519_v26, %v471_v29  ;;  %v527_v33 = vsel %vm518_vm3, %v1500_v32, %v435_v28 }
  0x98   : > { %1093 = vmatmul.mubr.msk.f32.vlgmr.msra.gmra.mxu0 %vm558_vm5, %v536_v30 }
  0x99   : > { %684 = vmatprep.mubr.f32.mxu0 %v1340_v6 }
  0x9a   : > { %v421_v34 = vpop.permute.xlu0 %420  ;;  %v487_v35 = vpop.permute.xlu1 %486 }
  0x9b   : > { %v544_v36 = vsel %vm535_vm4, %v527_v33, %v487_v35  ;;  %v520_v37 = vsel %vm518_vm3, %v1505_v38, %v421_v34  ;;  %v1699_v35 = vld [vmem:[%s1894_s1 + $0x8] sm:$0xff] }
  0x9c   : > { %1101 = vmatmul.mubr.msk.f32.vlgmr.msra.gmra.mxu1 %vm558_vm5, %v544_v36 }
  0x9d   : > { %732 = vmatprep.mubr.f32.mxu1 %v1340_v6 }
  0x9e   : > { %v473_v39 = vpop.permute.xlu0 %472  ;;  %v489_v40 = vpop.permute.xlu1 %488 }
  0x9f   : > { %v537_v45 = vsel %vm535_vm4, %v520_v37, %v473_v39  ;;  %v545_v32 = vsel %vm535_vm4, %v528_v31, %v489_v40 }
  0xa0   : > { %1094 = vmatmul.mubr.msk.f32.gmra.mxu0 %vm558_vm5, %v537_v45  ;;  %1102 = vmatmul.mubr.msk.f32.gmra.mxu1 %vm558_vm5, %v545_v32 }
  0xa1   : > { %690 = vmatprep.mubr.f32.mxu0 %v1340_v6  ;;  %738 = vmatprep.mubr.f32.mxu1 %v1340_v6 }
  0xa2   : > { %v423_v46 = vpop.permute.xlu0 %422  ;;  %v439_v47 = vpop.permute.xlu1 %438 }
  0xa3   : > { %v521_v27 = vsel %vm518_vm3, %v1514_v41, %v423_v46  ;;  %v529_v38 = vsel %vm518_vm3, %v1517_v42, %v439_v47 }
  0xa6   : > { %v475_v48 = vpop.permute.xlu0 %474  ;;  %v491_v49 = vpop.permute.xlu1 %490 }
  0xa7   : > { %v538_v50 = vsel %vm535_vm4, %v521_v27, %v475_v48  ;;  %v546_v51 = vsel %vm535_vm4, %v529_v38, %v491_v49  ;;  %v777_v27 = vld [vmem:[%s1894_s1 + $0x10] sm:$0xff] }
  0xa8   : > { %1095 = vmatmul.mubr.msk.f32.gmra.mxu0 %vm558_vm5, %v538_v50  ;;  %1103 = vmatmul.mubr.msk.f32.gmra.mxu1 %vm558_vm5, %v546_v51 }
  0xa9   : > { %696 = vmatprep.mubr.f32.mxu0 %v1340_v6  ;;  %744 = vmatprep.mubr.f32.mxu1 %v1340_v6 }
  0xaa   : > { %v425_v52 = vpop.permute.xlu0 %424  ;;  %v441_v55 = vpop.permute.xlu1 %440 }
  0xab   : > { %v522_v41 = vsel %vm518_vm3, %v1520_v43, %v425_v52  ;;  %v530_v42 = vsel %vm518_vm3, %v1523_v44, %v441_v55 }
  0xae   : > { %v477_v56 = vpop.permute.xlu0 %476  ;;  %v493_v57 = vpop.permute.xlu1 %492 }
  0xaf   : > { %v539_v58 = vsel %vm535_vm4, %v522_v41, %v477_v56  ;;  %v547_v59 = vsel %vm535_vm4, %v530_v42, %v493_v57  ;;  %v1724_v42 = vld [vmem:[%s1894_s1 + $0x18] sm:$0xff] }
  0xb0   : > { %1096 = vmatmul.mubr.msk.f32.gmra.mxu0 %vm558_vm5, %v539_v58  ;;  %1104 = vmatmul.mubr.msk.f32.gmra.mxu1 %vm558_vm5, %v547_v59 }
  0xb1   : > { %702 = vmatprep.mubr.f32.mxu0 %v1340_v6  ;;  %750 = vmatprep.mubr.f32.mxu1 %v1340_v6 }
  0xb2   : > { %v427_v60 = vpop.permute.xlu0 %426  ;;  %v443_v63 = vpop.permute.xlu1 %442 }
  0xb3   : > { %v523_v43 = vsel %vm518_vm3, %v1534_v53, %v427_v60  ;;  %v531_v44 = vsel %vm518_vm3, %v1537_v54, %v443_v63 }
  0xb6   : > { %v479_v0 = vpop.permute.xlu0 %478  ;;  %v495_v1 = vpop.permute.xlu1 %494 }
  0xb7   : > { %v540_v2 = vsel %vm535_vm4, %v523_v43, %v479_v0  ;;  %v548_v3 = vsel %vm535_vm4, %v531_v44, %v495_v1 }
  0xb8   : > { %1097 = vmatmul.mubr.msk.f32.gmra.mxu0 %vm558_vm5, %v540_v2  ;;  %1105 = vmatmul.mubr.msk.f32.gmra.mxu1 %vm558_vm5, %v548_v3 }
  0xb9   : > { %708 = vmatprep.mubr.f32.mxu0 %v1340_v6  ;;  %756 = vmatprep.mubr.f32.mxu1 %v1340_v6 }
  0xba   : > { %v429_v4 = vpop.permute.xlu0 %428  ;;  %v445_v5 = vpop.permute.xlu1 %444 }
  0xbb   : > { %v524_v53 = vsel %vm518_vm3, %v1550_v61, %v429_v4  ;;  %v532_v54 = vsel %vm518_vm3, %v1553_v62, %v445_v5 }
  0xbe   : > { %v481_v7 = vpop.permute.xlu0 %480  ;;  %v497_v8 = vpop.permute.xlu1 %496 }
  0xbf   : > { %v541_v9 = vsel %vm535_vm4, %v524_v53, %v481_v7  ;;  %v549_v12 = vsel %vm535_vm4, %v532_v54, %v497_v8 }
  0xc0   : > { %1098 = vmatmul.mubr.msk.f32.gmra.mxu0 %vm558_vm5, %v541_v9  ;;  %1106 = vmatmul.mubr.msk.f32.gmra.mxu1 %vm558_vm5, %v549_v12 }
  0xc1   : > { %714 = vmatprep.mubr.f32.mxu0 %v1340_v6  ;;  %762 = vmatprep.mubr.f32.mxu1 %v1340_v6 }
  0xc2   : > { %v431_v13 = vpop.permute.xlu0 %430  ;;  %v447_v15 = vpop.permute.xlu1 %446 }
  0xc3   : > { %v525_v61 = vsel %vm518_vm3, %v1568_v10, %v431_v13  ;;  %v533_v62 = vsel %vm518_vm3, %v1571_v11, %v447_v15 }
  0xc6   : > { %v483_v16 = vpop.permute.xlu0 %482  ;;  %v499_v18 = vpop.permute.xlu1 %498 }
  0xc7   : > { %v542_v19 = vsel %vm535_vm4, %v525_v61, %v483_v16  ;;  %v550_v20 = vsel %vm535_vm4, %v533_v62, %v499_v18 }
  0xc8   : > { %1099 = vmatmul.mubr.msk.f32.gmra.mxu0 %vm558_vm5, %v542_v19  ;;  %1107 = vmatmul.mubr.msk.f32.gmra.mxu1 %vm558_vm5, %v550_v20 }
  0xc9   : > { %720 = vmatprep.mubr.f32.mxu0 %v1340_v6  ;;  %768 = vmatprep.mubr.f32.mxu1 %v1340_v6  ;;  %v1683_v6 = vld [vmem:[%s1894_s1] sm:$0xff] }
  0xca   : > { %v433_v10 = vpop.permute.xlu0 %432  ;;  %v449_v21 = vpop.permute.xlu1 %448 }
  0xcb   : > { %v526_v11 = vsel %vm518_vm3, %v1578_v14, %v433_v10  ;;  %v534_v22 = vsel %vm518_vm3, %v1583_v17, %v449_v21 }
  0xce   : > { %v485_v23 = vpop.permute.xlu0 %484  ;;  %v501_v24 = vpop.permute.xlu1 %500 }
  0xcf   : > { %v543_v25 = vsel %vm535_vm4, %v526_v11, %v485_v23  ;;  %v551_v26 = vsel %vm535_vm4, %v534_v22, %v501_v24 }
  0xd0   : > { %1100 = vmatmul.mubr.msk.f32.gmra.mxu0 %vm558_vm5, %v543_v25  ;;  %1108 = vmatmul.mubr.msk.f32.gmra.mxu1 %vm558_vm5, %v551_v26 }
 0x158   : > { %v680_v14 = vpop.f32.mrf.mxu0 }
 0x159   : > { %v779_v17 = vadd.f32 %v1683_v6, %v680_v14 }
 0x15a   : > { %v682_v28 = vpop.f32.mrf.mxu0 }
 0x15b   : > { %795 = vst [vmem:[%s1686_s17] sm:$0xff] %v779_v17  ;;  %811 = vst [vmem:[%s1689_s27] sm:$0xff] %v682_v28  ;;  %v827_v29 = vadd.f32 %v779_v17, %v682_v28 }
 0x15c   : > { %v728_v30 = vpop.f32.mrf.mxu1 }
 0x15d   : > { %843 = vst [vmem:[%s1692_s29] sm:$0xff] %v827_v29  ;;  %v787_v33 = vadd.f32 %v1683_v6, %v728_v30 }
 0x15e   : > { %v730_v34 = vpop.f32.mrf.mxu1 }
 0x15f   : > { %803 = vst [vmem:[%s1686_s17 + $0x40] sm:$0xff] %v787_v33  ;;  %819 = vst [vmem:[%s1689_s27 + $0x40] sm:$0xff] %v730_v34  ;;  %v835_v36 = vadd.f32 %v787_v33, %v730_v34 }
 0x160   : > { %v686_v31 = vpop.f32.mrf.mxu0  ;;  %v734_v37 = vpop.f32.mrf.mxu1 }
 0x161   : > { %851 = vst [vmem:[%s1692_s29 + $0x40] sm:$0xff] %v835_v36  ;;  %v780_v39 = vadd.f32 %v1699_v35, %v686_v31  ;;  %v788_v40 = vadd.f32 %v1699_v35, %v734_v37 }
 0x162   : > { %v688_v45 = vpop.f32.mrf.mxu0  ;;  %v736_v32 = vpop.f32.mrf.mxu1 }
 0x163   : > { %796 = vst [vmem:[%s1686_s17 + $0x8] sm:$0xff] %v780_v39  ;;  %804 = vst [vmem:[%s1686_s17 + $0x48] sm:$0xff] %v788_v40  ;;  %v828_v46 = vadd.f32 %v780_v39, %v688_v45  ;;  %v836_v47 = vadd.f32 %v788_v40, %v736_v32 }
 0x164   : > { %812 = vst [vmem:[%s1689_s27 + $0x8] sm:$0xff] %v688_v45  ;;  %820 = vst [vmem:[%s1689_s27 + $0x48] sm:$0xff] %v736_v32 }
 0x165   : > { %844 = vst [vmem:[%s1692_s29 + $0x8] sm:$0xff] %v828_v46  ;;  %852 = vst [vmem:[%s1692_s29 + $0x48] sm:$0xff] %v836_v47 }
 0x168   : > { %v692_v38 = vpop.f32.mrf.mxu0  ;;  %v740_v48 = vpop.f32.mrf.mxu1 }
 0x169   : > { %v781_v49 = vadd.f32 %v777_v27, %v692_v38  ;;  %v789_v50 = vadd.f32 %v777_v27, %v740_v48 }
 0x16a   : > { %v694_v51 = vpop.f32.mrf.mxu0  ;;  %v742_v52 = vpop.f32.mrf.mxu1 }
 0x16b   : > { %797 = vst [vmem:[%s1686_s17 + $0x10] sm:$0xff] %v781_v49  ;;  %805 = vst [vmem:[%s1686_s17 + $0x50] sm:$0xff] %v789_v50  ;;  %v829_v55 = vadd.f32 %v781_v49, %v694_v51  ;;  %v837_v41 = vadd.f32 %v789_v50, %v742_v52 }
 0x16c   : > { %813 = vst [vmem:[%s1689_s27 + $0x10] sm:$0xff] %v694_v51  ;;  %821 = vst [vmem:[%s1689_s27 + $0x50] sm:$0xff] %v742_v52 }
 0x16d   : > { %845 = vst [vmem:[%s1692_s29 + $0x10] sm:$0xff] %v829_v55  ;;  %853 = vst [vmem:[%s1692_s29 + $0x50] sm:$0xff] %v837_v41 }
 0x170   : > { %v698_v56 = vpop.f32.mrf.mxu0  ;;  %v746_v57 = vpop.f32.mrf.mxu1 }
 0x171   : > { %v782_v58 = vadd.f32 %v1724_v42, %v698_v56  ;;  %v790_v59 = vadd.f32 %v1724_v42, %v746_v57 }
 0x172   : > { %v700_v60 = vpop.f32.mrf.mxu0  ;;  %v748_v63 = vpop.f32.mrf.mxu1 }
 0x173   : > { %798 = vst [vmem:[%s1686_s17 + $0x18] sm:$0xff] %v782_v58  ;;  %806 = vst [vmem:[%s1686_s17 + $0x58] sm:$0xff] %v790_v59  ;;  %v830_v43 = vadd.f32 %v782_v58, %v700_v60  ;;  %v838_v44 = vadd.f32 %v790_v59, %v748_v63 }
 0x174   : > { %814 = vst [vmem:[%s1689_s27 + $0x18] sm:$0xff] %v700_v60  ;;  %822 = vst [vmem:[%s1689_s27 + $0x58] sm:$0xff] %v748_v63 }
 0x175   : > { %846 = vst [vmem:[%s1692_s29 + $0x18] sm:$0xff] %v830_v43  ;;  %854 = vst [vmem:[%s1692_s29 + $0x58] sm:$0xff] %v838_v44 }
 0x178   : > { %v704_v0 = vpop.f32.mrf.mxu0  ;;  %v752_v1 = vpop.f32.mrf.mxu1 }
 0x179   : > { %v783_v2 = vadd.f32 %v1683_v6, %v704_v0  ;;  %v791_v3 = vadd.f32 %v1683_v6, %v752_v1 }
 0x17a   : > { %v706_v4 = vpop.f32.mrf.mxu0  ;;  %v754_v5 = vpop.f32.mrf.mxu1 }
 0x17b   : > { %799 = vst [vmem:[%s1686_s17 + $0x20] sm:$0xff] %v783_v2  ;;  %807 = vst [vmem:[%s1686_s17 + $0x60] sm:$0xff] %v791_v3  ;;  %v831_v53 = vadd.f32 %v783_v2, %v706_v4  ;;  %v839_v54 = vadd.f32 %v791_v3, %v754_v5 }
 0x17c   : > { %815 = vst [vmem:[%s1689_s27 + $0x20] sm:$0xff] %v706_v4  ;;  %823 = vst [vmem:[%s1689_s27 + $0x60] sm:$0xff] %v754_v5 }
 0x17d   : > { %847 = vst [vmem:[%s1692_s29 + $0x20] sm:$0xff] %v831_v53  ;;  %855 = vst [vmem:[%s1692_s29 + $0x60] sm:$0xff] %v839_v54 }
 0x180   : > { %v710_v7 = vpop.f32.mrf.mxu0  ;;  %v758_v8 = vpop.f32.mrf.mxu1 }
 0x181   : > { %v784_v9 = vadd.f32 %v1699_v35, %v710_v7  ;;  %v792_v12 = vadd.f32 %v1699_v35, %v758_v8 }
 0x182   : > { %v712_v13 = vpop.f32.mrf.mxu0  ;;  %v760_v15 = vpop.f32.mrf.mxu1 }
 0x183   : > { %800 = vst [vmem:[%s1686_s17 + $0x28] sm:$0xff] %v784_v9  ;;  %808 = vst [vmem:[%s1686_s17 + $0x68] sm:$0xff] %v792_v12  ;;  %v832_v61 = vadd.f32 %v784_v9, %v712_v13  ;;  %v840_v62 = vadd.f32 %v792_v12, %v760_v15 }
 0x184   : > { %816 = vst [vmem:[%s1689_s27 + $0x28] sm:$0xff] %v712_v13  ;;  %824 = vst [vmem:[%s1689_s27 + $0x68] sm:$0xff] %v760_v15 }
 0x185   : > { %848 = vst [vmem:[%s1692_s29 + $0x28] sm:$0xff] %v832_v61  ;;  %856 = vst [vmem:[%s1692_s29 + $0x68] sm:$0xff] %v840_v62 }
 0x188   : > { %v716_v16 = vpop.f32.mrf.mxu0  ;;  %v764_v18 = vpop.f32.mrf.mxu1 }
 0x189   : > { %v785_v19 = vadd.f32 %v777_v27, %v716_v16  ;;  %v793_v20 = vadd.f32 %v777_v27, %v764_v18 }
 0x18a   : > { %v718_v10 = vpop.f32.mrf.mxu0  ;;  %v766_v21 = vpop.f32.mrf.mxu1 }
 0x18b   : > { %801 = vst [vmem:[%s1686_s17 + $0x30] sm:$0xff] %v785_v19  ;;  %809 = vst [vmem:[%s1686_s17 + $0x70] sm:$0xff] %v793_v20  ;;  %v833_v11 = vadd.f32 %v785_v19, %v718_v10  ;;  %v841_v22 = vadd.f32 %v793_v20, %v766_v21 }
 0x18c   : > { %817 = vst [vmem:[%s1689_s27 + $0x30] sm:$0xff] %v718_v10  ;;  %825 = vst [vmem:[%s1689_s27 + $0x70] sm:$0xff] %v766_v21 }
 0x18d   : > { %849 = vst [vmem:[%s1692_s29 + $0x30] sm:$0xff] %v833_v11  ;;  %857 = vst [vmem:[%s1692_s29 + $0x70] sm:$0xff] %v841_v22 }
 0x190   : > { %v722_v23 = vpop.f32.mrf.mxu0  ;;  %v770_v24 = vpop.f32.mrf.mxu1 }
 0x191   : > { %v786_v25 = vadd.f32 %v1724_v42, %v722_v23  ;;  %v794_v26 = vadd.f32 %v1724_v42, %v770_v24 }
 0x192   : > { %v724_v6 = vpop.f32.mrf.mxu0  ;;  %v772_v14 = vpop.f32.mrf.mxu1 }
 0x193   : > { %802 = vst [vmem:[%s1686_s17 + $0x38] sm:$0xff] %v786_v25  ;;  %810 = vst [vmem:[%s1686_s17 + $0x78] sm:$0xff] %v794_v26  ;;  %v834_v17 = vadd.f32 %v786_v25, %v724_v6  ;;  %v842_v28 = vadd.f32 %v794_v26, %v772_v14  ;;  %s1210_s17 = sshll.u32 %s1343_s7, 4  ;;  %s1211_s17 = int_to_ptr.vmem [resolvable:$false] %s1210_s17 }
 0x194   : > { %818 = vst [vmem:[%s1689_s27 + $0x38] sm:$0xff] %v724_v6  ;;  %826 = vst [vmem:[%s1689_s27 + $0x78] sm:$0xff] %v772_v14  ;;  %s1212_s0 = scalar_lea.vmem %s1211_s17, 4096  ;;  %p1213_p1 = scmp.lt.s32.totalorder %s1771_s16, %s1211_s17 }
 0x195   : > { %p1214_p2 = scmp.lt.s32.totalorder %s1212_s0, %s1206_s21 }
 0x197   : > { %p1215_p3 = por %p1214_p2, %p1213_p1 }
 0x199   : > { %p1216_p5 = pnand %p1215_p3, %p1209_p0 }
 0x19b   : > { %1219 = shalt.err (!%p1216_p5)
}
 0x19c   : > { %s1220_s27 = scalar_lea.hbm %s1769_s11, 2048  ;;  %s1224_s24 = scalar_lea.hbm %s1897_s4, 4096 }
 0x19d   : > { %p1221_p6 = scmp.ne.s32.totalorder %s1769_s11, %s1220_s27  ;;  %p1225_p10 = scmp.lt.s32.totalorder %s1769_s11, %s1897_s4 }
 0x19e   : > { %p1226_p11 = scmp.lt.s32.totalorder %s1224_s24, %s1220_s27 }
 0x19f   : > { %p1222_p7 = pnand %p1221_p6, %p1420_p4 }
 0x1a0   : > { %p1227_p12 = por %p1226_p11, %p1225_p10 }
 0x1a1   : > { %p1223_p9 = pneg %p1222_p7 }
 0x1a3   : > { %p1228_p13 = pnand %p1227_p12, %p1223_p9 }
 0x1a5   : > { %1231 = shalt.err (!%p1228_p13)
}
 0x1a6   : > { %s1344_s0 = smov 128   ;;  %s1345_s21 = smov 8   ;;  %850 = vst [vmem:[%s1692_s29 + $0x38] sm:$0xff] %v834_v17  ;;  %858 = vst [vmem:[%s1692_s29 + $0x78] sm:$0xff] %v842_v28 }
 0x1a7   : > { %s1905_s13 = scalar_lea.sflag [#allocation5], %s1756_s14  ;;  %s1906_s17 = sand.u32 1, %s1322_s19  }
 0x1a8   : > { %1137 = dma.vmem_to_hbm [thread:$0]  (%p1420_p4), %s1771_s16, 2048, %s1769_s11, %s1905_s13, %s1344_s0, %s1344_s0, %s1345_s21  }
 0x1a9   : > { %s860_s27 = scalar_lea.sflag [#allocation3], %s1906_s17  ;;  %s1232_s15 = scalar_lea.vmem %s1778_s8, 2048 }
 0x1aa   : > { %p1233_p0 = scmp.ne.s32.totalorder %s1778_s8, %s1232_s15  ;;  %s1346_s10 = smov [#allocation2]  }
 0x1ab   : > { %s1236_s24 = sshll.u32 %s1346_s10, 4  ;;  %s1237_s24 = int_to_ptr.vmem [resolvable:$false] %s1236_s24 }
 0x1ac   : > { %p1234_p1 = pnand %p1233_p0, %p1420_p4  ;;  %s1238_s7 = scalar_lea.vmem %s1237_s24, 4096 }
 0x1ad   : > { %p1239_p3 = scmp.lt.s32.totalorder %s1778_s8, %s1237_s24  ;;  %p1240_p5 = scmp.lt.s32.totalorder %s1238_s7, %s1232_s15 }
 0x1ae   : > { %p1235_p2 = pneg %p1234_p1 }
 0x1af   : > { %p1241_p6 = por %p1240_p5, %p1239_p3 }
 0x1b1   : > { %p1242_p7 = pnand %p1241_p6, %p1235_p2 }
 0x1b3   : > { %1245 = shalt.err (!%p1242_p7)
}
 0x1b4   : > { %s1246_s29 = scalar_lea.hbm %s1776_s12, 2048  ;;  %s1250_s13 = scalar_lea.hbm %s1896_s3, 4096 }
 0x1b5   : > { %p1247_p9 = scmp.ne.s32.totalorder %s1776_s12, %s1246_s29  ;;  %p1251_p12 = scmp.lt.s32.totalorder %s1776_s12, %s1896_s3 }
 0x1b6   : > { %p1252_p13 = scmp.lt.s32.totalorder %s1250_s13, %s1246_s29 }
 0x1b7   : > { %p1248_p10 = pnand %p1247_p9, %p1420_p4 }
 0x1b8   : > { %p1253_p0 = por %p1252_p13, %p1251_p12 }
 0x1b9   : > { %p1249_p11 = pneg %p1248_p10 }
 0x1bb   : > { %p1254_p1 = pnand %p1253_p0, %p1249_p11 }
 0x1bd   : > { %1257 = shalt.err (!%p1254_p1)
}
 0x1be   : > { %1136 = dma.vmem_to_hbm [thread:$0]  (%p1420_p4), %s1778_s8, 2048, %s1776_s12, %s860_s27, %s1344_s0, %s1344_s0, %s1345_s21  }
 0x1bf   : > { %s1258_s15 = scalar_lea.vmem %s1789_s9, 2048  ;;  %s1347_s24 = smov [#allocation6]  }
 0x1c0   : > { %p1259_p2 = scmp.ne.s32.totalorder %s1789_s9, %s1258_s15  ;;  %s1262_s7 = sshll.u32 %s1347_s24, 4  ;;  %s1263_s7 = int_to_ptr.vmem [resolvable:$false] %s1262_s7 }
 0x1c1   : > { %s1264_s29 = scalar_lea.vmem %s1263_s7, 4096  ;;  %p1265_p6 = scmp.lt.s32.totalorder %s1789_s9, %s1263_s7 }
 0x1c2   : > { %p1260_p3 = pnand %p1259_p2, %p1420_p4  ;;  %p1266_p7 = scmp.lt.s32.totalorder %s1264_s29, %s1258_s15 }
 0x1c4   : > { %p1261_p5 = pneg %p1260_p3  ;;  %p1267_p9 = por %p1266_p7, %p1265_p6 }
 0x1c6   : > { %p1268_p10 = pnand %p1267_p9, %p1261_p5 }
 0x1c8   : > { %1271 = shalt.err (!%p1268_p10)
}
 0x1c9   : > { %s1272_s16 = scalar_lea.hbm %s1787_s25, 2048  ;;  %s1276_s27 = scalar_lea.hbm %s1898_s5, 4096 }
 0x1ca   : > { %p1273_p11 = scmp.ne.s32.totalorder %s1787_s25, %s1272_s16  ;;  %p1277_p0 = scmp.lt.s32.totalorder %s1787_s25, %s1898_s5 }
 0x1cb   : > { %p1278_p1 = scmp.lt.s32.totalorder %s1276_s27, %s1272_s16 }
 0x1cc   : > { %p1274_p12 = pnand %p1273_p11, %p1420_p4 }
 0x1cd   : > { %p1279_p2 = por %p1278_p1, %p1277_p0 }
 0x1ce   : > { %p1275_p13 = pneg %p1274_p12 }
 0x1d0   : > { %p1280_p3 = pnand %p1279_p2, %p1275_p13 }
 0x1d2   : > { %1283 = shalt.err (!%p1280_p3)
}
 0x1d3   : > { %s1907_s17 = scalar_lea.sflag [#allocation5], %s1756_s14 }
 0x1d4   : > { %1138 = dma.vmem_to_hbm [thread:$0]  (%p1420_p4), %s1789_s9, 2048, %s1787_s25, %s1907_s17, %s1344_s0, %s1344_s0, %s1345_s21  }
 0x1d5 PF: > { %p1152_p5 = scmp.ge.s32.totalorder %s1338_s23, 2  ;;  %s939_s10 = sand.u32 1, %s1318_s18  }
 0x1d6   : > { %s940_s15 = scalar_lea.sflag [#allocation3], %s939_s10 }
 0x1d7   : > { %p1143_p6 = pnand %p1152_p5, %p1429_p8 }
 0x1d9   : > { %p1144_p7 = pneg %p1143_p6 }
 0x1db   : > { %1309 = dma.done.wait (%p1144_p7), %s940_s15, 2048  }
 0x1dc   : > { %1311 = vsyncadd (%p1144_p7), %s940_s15, 4294965248  ;;  %s1908_s28 = sadd.s32 4294967294, %s1338_s23  }
 0x1dd   : > { %s948_s24 = sand.u32 1, %s1908_s28  }
 0x1de   : > { %s949_s7 = scalar_lea.sflag [#allocation5], %s948_s24 }
 0x1df   : > { %1313 = dma.done.wait (%p1144_p7), %s949_s7, 4096  }
 0x1e0   : > { %1315 = vsyncadd (%p1144_p7), %s949_s7, 4294963200  ;;  %s22_s23 = sadd.s32 1, %s1338_s23   ;;  %s1909_s18 = smov %s1322_s19 }
 0x1e1   : > { %p19_p4 = scmp.ge.s32.totalorder %s22_s23, 4   ;;  %s1910_s19 = smov %s1326_s20 }
 0x1e2   : > { %s1911_s20 = smov %s1435_s6  ;;  %s1912_s21 = smov %s1334_s22 }
 0x1e3   : > { %s1913_s22 = smov %s1915_s26  ;;  %21 = sbr.rel (!%p19_p4) target bundleno = 8 (0x8), region = 102 }
 0x1e8   :  { %963 = vsyncpa [#allocation3], 1 }
 0x1e9   :  { %965 = vsyncpa [#allocation3 + $0x1], 1 }
 0x1ea   :  { %966 = vsyncpa [#allocation5], 1 }
 0x1eb   :  { %968 = vsyncpa [#allocation5 + $0x1], 1 }

</bundles_post_ra>
